<compile_context>
chip_gen: v7x
topology: tpu7x:2x2x1
jax: 0.10.0
libtpu: 0.0.40
codegen_flags: <defaults>
</compile_context>

<pallas_src>
import jax
import jax.numpy as jnp
from jax import lax
from jax.experimental import pallas as pl
from jax.experimental.pallas import tpu as pltpu

H1 = 400      # true first hidden width
H1P = 512     # padded to a lane multiple
H2 = 300      # true second hidden width
H2P = 384     # padded to a lane multiple


def _round_up(n, m):
    return ((n + m - 1) // m) * m


def critic_kernel(z_ref, w1_ref, b1_ref, w2_ref, b2_ref, w3_ref, s_ref, out_ref):
    # ---- layer 1 (augmented): cols 0:400 = x@W1 + b1, cols 400:400+A = act,
    #      cols 400+A:512 = 0.  bf16 operands, f32 accumulation on the MXU.
    pre1 = jnp.dot(z_ref[...], w1_ref[...],
                   preferred_element_type=jnp.float32) + b1_ref[...]

    # Column-masked ReLU: ReLU only the real hidden columns; `act` passes through.
    col = lax.broadcasted_iota(jnp.int32, pre1.shape, 1)
    h1 = jnp.where(col < H1, jnp.maximum(pre1, 0.0), pre1)

    # ---- layer 2: single (512 x 384) matmul over the fused [h1 | act | 0] block.
    h2 = jnp.dot(h1.astype(jnp.bfloat16), w2_ref[...],
                 preferred_element_type=jnp.float32) + b2_ref[...]
    h2 = jnp.maximum(h2, 0.0)

    # ---- Linear(300 -> 1) + ReLU, lane-dense: contract h2's last dim against the
    #      w3 row on the MXU (flash-attn q@k.T dimension numbers) -> (1, tile_b) row.
    r = lax.dot_general(w3_ref[...], h2, (((1,), (1,)), ((), ())),
                        preferred_element_type=jnp.float32)
    r = jnp.maximum(r + s_ref[0], 0.0)

    # ---- Linear(1 -> 1): scalar affine from SMEM.
    out_ref[...] = r * s_ref[1] + s_ref[2]


def _choose_tiling(batch, tile_b):
    """Pick (tile, padded_batch) honoring bf16 sublane / lane-dense constraints."""
    b16 = _round_up(batch, 16)          # bf16 sublane tile
    if b16 <= 256:
        # Too small to split: one tile, block dims == full array dims.
        return b16, b16
    # Keep the grid >= 2 (v7x megacore) and the tile a multiple of 128 so the
    # lane-dense (1, tile) output block stays legal when the batch is tiled.
    tb = min(_round_up(tile_b, 128), _round_up((b16 + 1) // 2, 128))
    return tb, _round_up(b16, tb)


def critic_forward(x, act, params, *, tile_b=2048):
    B = x.shape[0]
    # Wrapper-side layout plumbing: fuse x/act into one bf16 operand (halves the
    # only streamed HBM input).
    z = jnp.concatenate([x, act], axis=1).astype(jnp.bfloat16)
    k1 = z.shape[1]

    tb, b_pad = _choose_tiling(B, tile_b)
    if b_pad != B:
        z = jnp.pad(z, ((0, b_pad - B), (0, 0)))
    grid = (b_pad // tb,)

    # VMEM budget: f32/bf16 intermediates (pre1, h1, h2) + double-buffered z/out
    # tiles + resident weights, with 2x headroom; clamped so it stays above the v5e
    # scoped default and below the v7x 64 MiB physical VMEM.
    est = (tb * (6 * H1P + 4 * H2P)               # pre1 f32 + h1 bf16 + h2 f32
           + 2 * tb * (2 * k1 + 4)                # double-buffered z (bf16) + out (f32)
           + 2 * 2 * (k1 * H1P + H1P * H2P)       # double-buffered bf16 weights
           + 4 * 2 * (H1P + 2 * H2P))             # f32 bias / w3 rows
    vmem_limit = int(max(16 << 20, min(56 << 20, 2 * est)))

    smem_spec = pl.BlockSpec(memory_space=pltpu.MemorySpace.SMEM)
    out = pl.pallas_call(
        critic_kernel,
        out_shape=jax.ShapeDtypeStruct((1, b_pad), jnp.float32),
        grid=grid,
        in_specs=[
            pl.BlockSpec((tb, k1), lambda i: (i, 0)),     # z tiles over the batch
            pl.BlockSpec((k1, H1P), lambda i: (0, 0)),    # W1 (augmented), resident
            pl.BlockSpec((1, H1P), lambda i: (0, 0)),     # b1 (padded)
            pl.BlockSpec((H1P, H2P), lambda i: (0, 0)),   # W2 (fused, padded)
            pl.BlockSpec((1, H2P), lambda i: (0, 0)),     # b2 (padded)
            pl.BlockSpec((1, H2P), lambda i: (0, 0)),     # w3 row (padded)
            smem_spec,                                    # [b3, w4, b4] scalars
        ],
        out_specs=pl.BlockSpec((1, tb), lambda i: (0, i)),
        compiler_params=pltpu.CompilerParams(
            dimension_semantics=("parallel",),
            vmem_limit_bytes=vmem_limit,
        ),
    )(z, params["w1aug"], params["b1p"], params["w2c"], params["b2p"],
      params["w3p"], params["s"])
    # Padded tail rows hold bias-only garbage; slice them off.
    return out.reshape(b_pad, 1)[:B]


def init_params(key, n_state, n_action):
    """nn.Linear-style U(-1/sqrt(fan_in), +1/sqrt(fan_in)) init.

    Returns (kernel_params, ref_params): kernel_params are the padded / augmented /
    bf16 tensors consumed by the Pallas kernel; ref_params are the plain f32 ones.
    """
    ks = jax.random.split(key, 8)

    def uni(k, shape, fan_in):
        bound = 1.0 / jnp.sqrt(jnp.float32(fan_in))
        return jax.random.uniform(k, shape, jnp.float32, -bound, bound)

    w1 = uni(ks[0], (n_state, H1), n_state)
    b1 = uni(ks[1], (H1,), n_state)
    w2 = uni(ks[2], (H1 + n_action, H2), H1 + n_action)
    b2 = uni(ks[3], (H2,), H1 + n_action)
    w3 = uni(ks[4], (H2, 1), H2)
    b3 = uni(ks[5], (), H2)
    w4 = uni(ks[6], (), 1)
    b4 = uni(ks[7], (), 1)

    k1 = n_state + n_action
    # Augmented W1: routes x through W1 into cols 0:400 and act (identity block)
    # into cols 400:400+n_action of the first-layer output.
    w1aug = jnp.zeros((k1, H1P), jnp.float32)
    w1aug = w1aug.at[:n_state, :H1].set(w1)
    idx = jnp.arange(n_action)
    w1aug = w1aug.at[n_state + idx, H1 + idx].set(1.0)
    b1p = jnp.zeros((1, H1P), jnp.float32).at[0, :H1].set(b1)

    # Fused, padded W2: rows 0:400 act on h1, rows 400:400+n_action act on `act`.
    w2c = jnp.zeros((H1P, H2P), jnp.float32).at[:H1 + n_action, :H2].set(w2)
    b2p = jnp.zeros((1, H2P), jnp.float32).at[0, :H2].set(b2)
    w3p = jnp.zeros((1, H2P), jnp.float32).at[0, :H2].set(w3[:, 0])

    kernel_params = {
        "w1aug": w1aug.astype(jnp.bfloat16),
        "b1p": b1p,
        "w2c": w2c.astype(jnp.bfloat16),
        "b2p": b2p,
        "w3p": w3p,
        "s": jnp.stack([b3, w4, b4]).astype(jnp.float32),   # [b3, w4, b4]
    }
    ref_params = {"w1": w1, "b1": b1, "w2": w2, "b2": b2,
                  "w3": w3, "b3": b3, "w4": w4, "b4": b4}
    return kernel_params, ref_params


def critic_reference(x, act, p):
    h1 = jnp.maximum(x @ p["w1"] + p["b1"], 0.0)
    cat = jnp.concatenate([h1, act], axis=1)
    h2 = jnp.maximum(cat @ p["w2"] + p["b2"], 0.0)
    h3 = jnp.maximum(h2 @ p["w3"] + p["b3"], 0.0)
    return h3 * p["w4"] + p["b4"]


if __name__ == "__main__":
    n_state, n_action = 32, 8
    key = jax.random.PRNGKey(0)
    k_params, k_data = jax.random.split(key)
    kernel_params, ref_params = init_params(k_params, n_state, n_action)

    # batch=2 exercises the single-tile path; batch=300 exercises the tiled,
    # grid>=2, lane-dense-output path.
    for batch in (2, 300):
        kx, ka = jax.random.split(jax.random.fold_in(k_data, batch))
        x = jax.random.normal(kx, (batch, n_state), jnp.float32)
        act = jax.random.normal(ka, (batch, n_action), jnp.float32)

        out = jax.block_until_ready(critic_forward(x, act, kernel_params))
        ref = critic_reference(x, act, ref_params)
        assert out.shape == (batch, 1)
        # bf16 matmul operands with f32 accumulation -> relaxed tolerance vs f32 ref.
        assert jnp.allclose(out, ref, atol=5e-2, rtol=5e-2), (batch, out, ref)

    print("KERNEL_OK")
</pallas_src>

<mosaic_0001>
module attributes {stable_mosaic.version = 11 : i64} {
  func.func @critic_kernel(%arg0: i32, %arg1: memref<16x40xbf16, #tpu.memory_space<vmem>>, %arg2: memref<40x512xbf16, #tpu.memory_space<vmem>>, %arg3: memref<1x512xf32, #tpu.memory_space<vmem>>, %arg4: memref<512x384xbf16, #tpu.memory_space<vmem>>, %arg5: memref<1x384xf32, #tpu.memory_space<vmem>>, %arg6: memref<1x384xf32, #tpu.memory_space<vmem>>, %arg7: memref<3xf32, #tpu.memory_space<smem>>, %arg8: memref<1x16xf32, #tpu.memory_space<vmem>>) attributes {dimension_semantics = [#tpu.dimension_semantics<parallel>], iteration_bounds = array<i64: 1>, scalar_prefetch = 0 : i64, scratch_operands = 0 : i64, tpu.core_type = #tpu.core_type<tc>, window_params = [{transform_indices = @transform_0, window_bounds = array<i64: 16, 40>}, {pipeline_mode = #tpu.pipeline_mode<synchronous>, transform_indices = @transform_1, window_bounds = array<i64: 40, 512>}, {pipeline_mode = #tpu.pipeline_mode<synchronous>, transform_indices = @transform_2, window_bounds = array<i64: 1, 512>}, {pipeline_mode = #tpu.pipeline_mode<synchronous>, transform_indices = @transform_3, window_bounds = array<i64: 512, 384>}, {pipeline_mode = #tpu.pipeline_mode<synchronous>, transform_indices = @transform_4, window_bounds = array<i64: 1, 384>}, {pipeline_mode = #tpu.pipeline_mode<synchronous>, transform_indices = @transform_5, window_bounds = array<i64: 1, 384>}, {transform_indices = @transform_6, window_bounds = array<i64: 3>}, {transform_indices = @transform_7, window_bounds = array<i64: 1, 16>}]} {
    %c0 = arith.constant 0 : index
    %c0_0 = arith.constant 0 : index
    %0 = vector.load %arg1[%c0, %c0_0] : memref<16x40xbf16, #tpu.memory_space<vmem>>, vector<16x40xbf16>
    %c0_1 = arith.constant 0 : index
    %c0_2 = arith.constant 0 : index
    %1 = vector.load %arg2[%c0_1, %c0_2] : memref<40x512xbf16, #tpu.memory_space<vmem>>, vector<40x512xbf16>
    %cst = arith.constant dense<0.000000e+00> : vector<16x512xf32>
    %2 = tpu.matmul %0, %1, %cst {dimension_numbers = #tpu.dot_dimension_numbers<[1], [0], [0], [1], [0, 0, 1, 1], [], []>} : vector<16x40xbf16>, vector<40x512xbf16>, vector<16x512xf32> -> vector<16x512xf32>
    %c0_3 = arith.constant 0 : index
    %c0_4 = arith.constant 0 : index
    %3 = vector.load %arg3[%c0_3, %c0_4] : memref<1x512xf32, #tpu.memory_space<vmem>>, vector<1x512xf32>
    %4 = vector.broadcast %3 : vector<1x512xf32> to vector<16x512xf32>
    %5 = arith.addf %2, %4 : vector<16x512xf32>
    %6 = tpu.iota {dimensions = array<i32: 1>} : vector<16x512xi32>
    %c400_i32 = arith.constant 400 : i32
    %7 = vector.broadcast %c400_i32 : i32 to vector<16x512xi32>
    %8 = arith.cmpi slt, %6, %7 : vector<16x512xi32>
    %cst_5 = arith.constant 0.000000e+00 : f32
    %9 = vector.broadcast %cst_5 : f32 to vector<16x512xf32>
    %10 = arith.maximumf %5, %9 : vector<16x512xf32>
    %11 = arith.select %8, %10, %5 : vector<16x512xi1>, vector<16x512xf32>
    %12 = arith.truncf %11 : vector<16x512xf32> to vector<16x512xbf16>
    %c0_6 = arith.constant 0 : index
    %c0_7 = arith.constant 0 : index
    %13 = vector.load %arg4[%c0_6, %c0_7] : memref<512x384xbf16, #tpu.memory_space<vmem>>, vector<512x384xbf16>
    %cst_8 = arith.constant dense<0.000000e+00> : vector<16x384xf32>
    %14 = tpu.matmul %12, %13, %cst_8 {dimension_numbers = #tpu.dot_dimension_numbers<[1], [0], [0], [1], [0, 0, 1, 1], [], []>} : vector<16x512xbf16>, vector<512x384xbf16>, vector<16x384xf32> -> vector<16x384xf32>
    %c0_9 = arith.constant 0 : index
    %c0_10 = arith.constant 0 : index
    %15 = vector.load %arg5[%c0_9, %c0_10] : memref<1x384xf32, #tpu.memory_space<vmem>>, vector<1x384xf32>
    %16 = vector.broadcast %15 : vector<1x384xf32> to vector<16x384xf32>
    %17 = arith.addf %14, %16 : vector<16x384xf32>
    %cst_11 = arith.constant 0.000000e+00 : f32
    %18 = vector.broadcast %cst_11 : f32 to vector<16x384xf32>
    %19 = arith.maximumf %17, %18 : vector<16x384xf32>
    %c0_12 = arith.constant 0 : index
    %c0_13 = arith.constant 0 : index
    %20 = vector.load %arg6[%c0_12, %c0_13] : memref<1x384xf32, #tpu.memory_space<vmem>>, vector<1x384xf32>
    %cst_14 = arith.constant dense<0.000000e+00> : vector<1x16xf32>
    %21 = tpu.matmul %20, %19, %cst_14 {dimension_numbers = #tpu.dot_dimension_numbers<[1], [1], [0], [0], [0, 0, 1, 0], [], []>} : vector<1x384xf32>, vector<16x384xf32>, vector<1x16xf32> -> vector<1x16xf32>
    %c0_15 = arith.constant 0 : index
    %22 = memref.load %arg7[%c0_15] : memref<3xf32, #tpu.memory_space<smem>>
    %23 = vector.broadcast %22 : f32 to vector<1x16xf32>
    %24 = arith.addf %21, %23 : vector<1x16xf32>
    %cst_16 = arith.constant 0.000000e+00 : f32
    %25 = vector.broadcast %cst_16 : f32 to vector<1x16xf32>
    %26 = arith.maximumf %24, %25 : vector<1x16xf32>
    %c1 = arith.constant 1 : index
    %27 = memref.load %arg7[%c1] : memref<3xf32, #tpu.memory_space<smem>>
    %28 = vector.broadcast %27 : f32 to vector<1x16xf32>
    %29 = arith.mulf %26, %28 : vector<1x16xf32>
    %c2 = arith.constant 2 : index
    %30 = memref.load %arg7[%c2] : memref<3xf32, #tpu.memory_space<smem>>
    %31 = vector.broadcast %30 : f32 to vector<1x16xf32>
    %32 = arith.addf %29, %31 : vector<1x16xf32>
    %c0_17 = arith.constant 0 : index
    %c0_18 = arith.constant 0 : index
    %33 = vector.load %arg8[%c0_17, %c0_18] : memref<1x16xf32, #tpu.memory_space<vmem>>, vector<1x16xf32>
    tpu.vector_store %arg8[%c0_17, %c0_18], %32 {strides = array<i32>} : memref<1x16xf32, #tpu.memory_space<vmem>>, vector<1x16xf32>,
    return
  }
  func.func @transform_0(%arg0: i32) -> (i32, i32) {
    %c0_i32 = arith.constant 0 : i32
    %c0_i32_0 = arith.constant 0 : i32
    return %arg0, %c0_i32 : i32, i32
  }
  func.func @transform_1(%arg0: i32) -> (i32, i32) {
    %c0_i32 = arith.constant 0 : i32
    %c0_i32_0 = arith.constant 0 : i32
    %c0_i32_1 = arith.constant 0 : i32
    return %c0_i32, %c0_i32_0 : i32, i32
  }
  func.func @transform_2(%arg0: i32) -> (i32, i32) {
    %c0_i32 = arith.constant 0 : i32
    %c0_i32_0 = arith.constant 0 : i32
    %c0_i32_1 = arith.constant 0 : i32
    return %c0_i32, %c0_i32_0 : i32, i32
  }
  func.func @transform_3(%arg0: i32) -> (i32, i32) {
    %c0_i32 = arith.constant 0 : i32
    %c0_i32_0 = arith.constant 0 : i32
    %c0_i32_1 = arith.constant 0 : i32
    return %c0_i32, %c0_i32_0 : i32, i32
  }
  func.func @transform_4(%arg0: i32) -> (i32, i32) {
    %c0_i32 = arith.constant 0 : i32
    %c0_i32_0 = arith.constant 0 : i32
    %c0_i32_1 = arith.constant 0 : i32
    return %c0_i32, %c0_i32_0 : i32, i32
  }
  func.func @transform_5(%arg0: i32) -> (i32, i32) {
    %c0_i32 = arith.constant 0 : i32
    %c0_i32_0 = arith.constant 0 : i32
    %c0_i32_1 = arith.constant 0 : i32
    return %c0_i32, %c0_i32_0 : i32, i32
  }
  func.func @transform_6(%arg0: i32) -> i32 {
    %c0_i32 = arith.constant 0 : i32
    %c0_i32_0 = arith.constant 0 : i32
    return %c0_i32 : i32
  }
  func.func @transform_7(%arg0: i32) -> (i32, i32) {
    %c0_i32 = arith.constant 0 : i32
    %c0_i32_0 = arith.constant 0 : i32
    return %c0_i32, %arg0 : i32, i32
  }
}

</mosaic_0001>

<bundles_post_ra>
// kernel: tpu_custom_call.1
= control target key start
LH: loop header
LB: loop body
LE: loop exit
PB: predicated region body
PF: predicated region fallthrough
CT: control target
= control target key end

     0   :  { %12 = vsyncpa [#allocation3], 0  ;;  %s1916_s0 = inlined_call_operand.hbm [shape: bf16[16,40], index: 0, kind: input, shape index: {}]   ;;  %s1917_s1 = inlined_call_operand.hbm [shape: bf16[40,512], index: 1, kind: input, shape index: {}]   ;;  %s1918_s2 = inlined_call_operand.vmem [shape: f32[1,512], index: 2, kind: input, shape index: {}]   ;;  %s1919_s3 = inlined_call_operand.hbm [shape: bf16[512,384], index: 3, kind: input, shape index: {}]   ;;  %s1920_s4 = inlined_call_operand.vmem [shape: f32[1,384], index: 4, kind: input, shape index: {}]   ;;  %s1921_s5 = inlined_call_operand.vmem [shape: f32[1,384], index: 5, kind: input, shape index: {}]   ;;  %s1922_s6 = inlined_call_operand.vmem [shape: f32[3], index: 6, kind: input, shape index: {}]   ;;  %s1923_s7 = inlined_call_operand.hbm [shape: f32[1,16], index: 7, kind: output, shape index: {}]  }
   0x1   :  { %13 = vsyncpa [#allocation7], 0 }
   0x2   :  { %14 = vsyncpa [#allocation5], 0 }
   0x3   :  { %15 = vsyncpa [#allocation4], 0  ;;  %s1774_s24 = smov [#allocation6]   ;;  %s1666_s28 = scalar_lea.hbm %s1917_s1, 1280 }
   0x4   :  { %s33_s25 = sshll.u32 %s1774_s24, 4  ;;  %p1667_p0 = scmp.ne.s32.totalorder %s1917_s1, %s1666_s28  ;;  %s34_s25 = int_to_ptr.vmem [resolvable:$true] %s33_s25 }
   0x5   :  { %p1670_p1 = scmp.lt.u32.totalorder %s1666_s28, %s1917_s1 }
   0x7   :  { %p1672_p2 = pnand %p1670_p1, %p1667_p0 }
   0x9   :  { %1675 = shalt.err (!%p1672_p2)
}
   0xa   :  { %s1676_s10 = scalar_lea.vmem %s34_s25, 1280  ;;  %p1681_p4 = scmp.lt.s32.totalorder %s34_s25, %s34_s25 }
   0xb   :  { %p1677_p3 = scmp.ne.s32.totalorder %s34_s25, %s1676_s10  ;;  %p1682_p5 = scmp.lt.s32.totalorder %s1676_s10, %s1676_s10 }
   0xd   :  { %p1683_p6 = por %p1682_p5, %p1681_p4 }
   0xf   :  { %p1684_p7 = pnand %p1683_p6, %p1677_p3 }
  0x11   :  { %1687 = shalt.err (!%p1684_p7)
}
  0x12   :  { %s1775_s11 = smov 256   ;;  %s1776_s12 = smov 16  }
  0x13   :  { %39 = dma.hbm_to_vmem [thread:$0]  %s1917_s1, 1280, %s34_s25, [#allocation7], %s1775_s11, %s1775_s11, %s1776_s12  }
  0x14   :  { %s1777_s15 = smov [#allocation2]   ;;  %s1688_s19 = scalar_lea.hbm %s1916_s0, 128 }
  0x15   :  { %s21_s16 = sshll.u32 %s1777_s15, 4  ;;  %p1689_p8 = scmp.ne.s32.totalorder %s1916_s0, %s1688_s19  ;;  %s22_s16 = int_to_ptr.vmem [resolvable:$true] %s21_s16 }
  0x16   :  { %p1692_p9 = scmp.lt.u32.totalorder %s1688_s19, %s1916_s0 }
  0x18   :  { %p1694_p10 = pnand %p1692_p9, %p1689_p8 }
  0x1a   :  { %1697 = shalt.err (!%p1694_p10)
}
  0x1b   :  { %s1698_s24 = scalar_lea.vmem %s22_s16, 128  ;;  %p1703_p12 = scmp.lt.s32.totalorder %s22_s16, %s22_s16 }
  0x1c   :  { %p1699_p11 = scmp.ne.s32.totalorder %s22_s16, %s1698_s24  ;;  %p1704_p13 = scmp.lt.s32.totalorder %s1698_s24, %s1698_s24 }
  0x1e   :  { %p1705_p0 = por %p1704_p13, %p1703_p12 }
  0x20   :  { %p1706_p1 = pnand %p1705_p0, %p1699_p11 }
  0x22   :  { %1709 = shalt.err (!%p1706_p1)
}
  0x23   :  { %s1778_s1 = smov 64   ;;  %s1779_s25 = smov 4  }
  0x24   :  { %27 = dma.hbm_to_vmem [thread:$0]  %s1916_s0, 128, %s22_s16, [#allocation3], %s1778_s1, %s1778_s1, %s1779_s25  }
  0x25   :  { %s1780_s28 = smov [#allocation8]   ;;  %s64_s9 = sshll.u32 %s1922_s6, 4  ;;  %s65_s9 = int_to_ptr.vmem [resolvable:$true] %s64_s9 }
  0x26   :  { %s47_s29 = sshll.u32 %s1780_s28, 4  ;;  %s1710_s12 = scalar_lea.hbm %s1919_s3, 12288  ;;  %s48_s29 = int_to_ptr.vmem [resolvable:$true] %s47_s29 }
  0x27   :  { %p1711_p2 = scmp.ne.s32.totalorder %s1919_s3, %s1710_s12  ;;  %p1714_p3 = scmp.lt.u32.totalorder %s1710_s12, %s1919_s3 }
  0x29   :  { %p1716_p4 = pnand %p1714_p3, %p1711_p2 }
  0x2b   :  { %1719 = shalt.err (!%p1716_p4)
}
  0x2c   :  { %s1720_s0 = scalar_lea.vmem %s48_s29, 12288  ;;  %p1725_p6 = scmp.lt.s32.totalorder %s48_s29, %s48_s29 }
  0x2d   :  { %p1721_p5 = scmp.ne.s32.totalorder %s48_s29, %s1720_s0  ;;  %p1726_p7 = scmp.lt.s32.totalorder %s1720_s0, %s1720_s0 }
  0x2f   :  { %p1727_p8 = por %p1726_p7, %p1725_p6 }
  0x31   :  { %p1728_p9 = pnand %p1727_p8, %p1721_p5 }
  0x33   :  { %1731 = shalt.err (!%p1728_p9)
}
  0x34   :  { %s1781_s6 = smov 192   ;;  %s1782_s16 = smov 12  }
  0x35   :  { %53 = dma.hbm_to_vmem [thread:$0]  %s1919_s3, 12288, %s48_s29, [#allocation7], %s1781_s6, %s1781_s6, %s1782_s16  }
  0x36   :  { %s1732_s20 = scalar_lea.vmem %s65_s9, 16  ;;  %p1737_p11 = scmp.lt.s32.totalorder %s65_s9, %s65_s9 }
  0x37   :  { %p1733_p10 = scmp.ne.s32.totalorder %s65_s9, %s1732_s20  ;;  %p1738_p12 = scmp.lt.s32.totalorder %s1732_s20, %s1732_s20 }
  0x39   :  { %p1739_p13 = por %p1738_p12, %p1737_p11 }
  0x3b   :  { %p1740_p0 = pnand %p1739_p13, %p1733_p10 }
  0x3d   :  { %1743 = shalt.err (!%p1740_p0)
}
  0x3e   :  { %s1783_s21 = smov [#allocation9]  }
  0x3f   :  { %67 = dma.vmem_to_smem %s65_s9, 16, %s1783_s21, [#allocation5]  }
  0x40   :  { %1766 = dma.done.wait [#allocation3], 128  }
  0x41   :  { %1767 = vsyncadd [#allocation3], 4294967168 }
  0x42   :  { %1768 = dma.done.wait [#allocation7], 13568  }
  0x43   :  { %1769 = vsyncadd [#allocation7], 4294953728 }
  0x44   :  { %1770 = dma.done.wait [#allocation5], 16  }
  0x45   :  { %1771 = vsyncadd [#allocation5], 4294967280 }
  0x46   :  { %80 = sfence }
  0x47   :  { %v1521_v0 = vld [vmem:[#allocation6 + $0x4] ss:$16 sps:$4 sm:$0xff]   ;;  %v1523_v1 = vld [vmem:[#allocation6] ss:$16 sps:$4 sm:$0xff]   ;;  %v1784_v2 = vmov 0   ;;  %vm175_vm0 = vcmask 1043456  }
  0x48   :  { %220 = vmatprep.mubr.bf16.mxu1 %v1784_v2  ;;  %188 = vmatprep.subr.bf16.mxu1 %v1521_v0  ;;  %v1524_v3 = vld [vmem:[#allocation6 + $0x24] ss:$16 sps:$4 sm:$0xff]   ;;  %v1526_v5 = vld [vmem:[#allocation6 + $0x20] ss:$16 sps:$4 sm:$0xff]   ;;  %v1532_v8 = vld [vmem:[#allocation6 + $0xc] ss:$16 sps:$4 sm:$0xff]  }
  0x49   :  { %v92_v4 = vld [vmem:[#allocation6 + $0x40] sm:$0xff]  ;;  %189 = vmatpush1.bf16.msra.mxu1 %v1523_v1  ;;  %v1529_v11 = vld [vmem:[#allocation2] sm:$0xff]   ;;  %v1543_v16 = vld [vmem:[#allocation8 + $0x18] ss:$12 sps:$4 sm:$0xff]   ;;  %vm171_vm1 = vcmask 326656   ;;  %vm1786_vm3 = vmmov 0  }
  0x4a   :  { %190 = vmatprep.subr.bf16.mxu1 %v1524_v3  ;;  %v1329_v6 = vcombine.high %v92_v4, %v92_v4  ;;  %v1328_v7 = vcombine.low %v92_v4, %v92_v4  ;;  %v1538_v9 = vld [vmem:[#allocation8 + $0x4] ss:$12 sps:$4 sm:$0xff]   ;;  %v1540_v12 = vld [vmem:[#allocation8] ss:$12 sps:$4 sm:$0xff]   ;;  %v1530_v13 = vld [vmem:[#allocation6 + $0x8] ss:$16 sps:$4 sm:$0xff]   ;;  %v96_v4 = vlaneseq }
  0x4b   :  { %960 = vmatprep.subr.bf16.mxu0 %v1538_v9  ;;  %v1541_v14 = vld [vmem:[#allocation8 + $0x1c] ss:$12 sps:$4 sm:$0xff]   ;;  %v1544_v18 = vld [vmem:[#allocation8 + $0x34] ss:$12 sps:$4 sm:$0xff]   ;;  %v1547_v22 = vld [vmem:[#allocation8 + $0x4c] ss:$12 sps:$4 sm:$0xff]  }
  0x4c   :  { %v177_v10 = vsel %vm175_vm0, %v1328_v7, 0  ;;  %v1535_v15 = vld [vmem:[#allocation6 + $0x2c] ss:$16 sps:$4 sm:$0xff]   ;;  %961 = vmatpush1.bf16.msra.mxu0 %v1540_v12  ;;  %v1533_v19 = vld [vmem:[#allocation6 + $0x28] ss:$16 sps:$4 sm:$0xff]   ;;  %s1433_s25 = sld [smem:[#allocation9 + $0x2]] }
  0x4d   :  { %191 = vmatpush1.bf16.msra.mxu1 %v1526_v5  ;;  %v93_v17 = vld [vmem:[#allocation6 + $0x48] sm:$0xff]  ;;  %962 = vmatprep.subr.bf16.mxu0 %v1541_v14  ;;  %v1549_v24 = vld [vmem:[#allocation8 + $0x48] ss:$12 sps:$4 sm:$0xff]   ;;  %v1550_v26 = vld [vmem:[#allocation8 + $0x64] ss:$12 sps:$4 sm:$0xff]   ;;  %v97_v5 = vshrl.u32 %v96_v4, 7 }
  0x4e   :  { %1332 = vmatprep.subr.msk.bf16.mxu1 %vm175_vm0, %v1329_v6  ;;  %v1546_v20 = vld [vmem:[#allocation8 + $0x30] ss:$12 sps:$4 sm:$0xff]   ;;  %v1330_v21 = vcombine.low %v93_v17, %v93_v17  ;;  %v1331_v23 = vcombine.high %v93_v17, %v93_v17  ;;  %v1564_v27 = vld [vmem:[#allocation8 + $0xc8] ss:$12 sps:$4 sm:$0xff]   ;;  %v1552_v28 = vld [vmem:[#allocation8 + $0x60] ss:$12 sps:$4 sm:$0xff]  }
  0x4f   :  { %v1553_v29 = vld [vmem:[#allocation8 + $0x7c] ss:$12 sps:$4 sm:$0xff]   ;;  %v1569_v31 = vld [vmem:[#allocation8 + $0xe0] ss:$12 sps:$4 sm:$0xff]   ;;  %v1555_v32 = vld [vmem:[#allocation8 + $0x78] ss:$12 sps:$4 sm:$0xff]  }
  0x50   :  { %963 = vmatpush1.bf16.msra.mxu0 %v1543_v16  ;;  %v183_v25 = vsel %vm175_vm0, %v1330_v21, 0  ;;  %v1566_v30 = vld [vmem:[#allocation8 + $0x8] ss:$12 sps:$4 sm:$0xff]   ;;  %v1571_v34 = vld [vmem:[#allocation8 + $0x20] ss:$12 sps:$4 sm:$0xff]   ;;  %v1874_v6 = vsub.s32 0, %v97_v5 }
  0x51   :  { %193 = vmatpush1.bf16.msra.mxu1 %v177_v10  ;;  %964 = vmatprep.subr.bf16.mxu0 %v1544_v18  ;;  %v1556_v33 = vld [vmem:[#allocation8 + $0x94] ss:$12 sps:$4 sm:$0xff]   ;;  %v1574_v35 = vld [vmem:[#allocation8 + $0xf8] ss:$12 sps:$4 sm:$0xff]   ;;  %v1558_v36 = vld [vmem:[#allocation8 + $0x90] ss:$12 sps:$4 sm:$0xff]  }
  0x52   :  { %231 = vmatprep.subr.bf16.mxu1 %v1532_v8  ;;  %v1559_v37 = vld [vmem:[#allocation8 + $0xac] ss:$12 sps:$4 sm:$0xff]   ;;  %v1579_v39 = vld [vmem:[#allocation8 + $0x110] ss:$12 sps:$4 sm:$0xff]   ;;  %v1561_v40 = vld [vmem:[#allocation8 + $0xa8] ss:$12 sps:$4 sm:$0xff]  }
  0x53   :  { %v1576_v38 = vld [vmem:[#allocation8 + $0x38] ss:$12 sps:$4 sm:$0xff]   ;;  %v1581_v42 = vld [vmem:[#allocation8 + $0x50] ss:$12 sps:$4 sm:$0xff]   ;;  %v1565_v43 = vld [vmem:[#allocation8 + $0xc0] ss:$12 sps:$4 sm:$0xff]  }
  0x54   :  { %1333 = vmatmul.mubr.msk.bf16.vlgmr.msra.gmra.mrb[0].mxu1 %vm171_vm1, %v1529_v11  ;;  %965 = vmatpush1.bf16.msra.mxu0 %v1546_v20  ;;  %v1562_v41 = vld [vmem:[#allocation8 + $0xc4] ss:$12 sps:$4 sm:$0xff]   ;;  %v1584_v44 = vld [vmem:[#allocation8 + $0x128] ss:$12 sps:$4 sm:$0xff]   ;;  %v1589_v47 = vld [vmem:[#allocation8 + $0x140] ss:$12 sps:$4 sm:$0xff]  }
  0x55   :  { %232 = vmatpush1.bf16.msra.mxu1 %v1530_v13  ;;  %263 = vmatprep.mubr.bf16.mxu1 %v1784_v2  ;;  %v1567_v45 = vld [vmem:[#allocation8 + $0xdc] ss:$12 sps:$4 sm:$0xff]   ;;  %v1570_v48 = vld [vmem:[#allocation8 + $0xd8] ss:$12 sps:$4 sm:$0xff]   ;;  %v1572_v49 = vld [vmem:[#allocation8 + $0xf4] ss:$12 sps:$4 sm:$0xff]  }
  0x56   :  { %233 = vmatprep.subr.bf16.mxu1 %v1535_v15  ;;  %966 = vmatprep.subr.bf16.mxu0 %v1547_v22  ;;  %v1586_v46 = vld [vmem:[#allocation8 + $0x68] ss:$12 sps:$4 sm:$0xff]   ;;  %v1591_v50 = vld [vmem:[#allocation8 + $0x80] ss:$12 sps:$4 sm:$0xff]   ;;  %v1575_v51 = vld [vmem:[#allocation8 + $0xf0] ss:$12 sps:$4 sm:$0xff]  }
  0x57   :  { %v1577_v52 = vld [vmem:[#allocation8 + $0x10c] ss:$12 sps:$4 sm:$0xff]   ;;  %v1580_v53 = vld [vmem:[#allocation8 + $0x108] ss:$12 sps:$4 sm:$0xff]   ;;  %v1582_v54 = vld [vmem:[#allocation8 + $0x124] ss:$12 sps:$4 sm:$0xff]  }
  0x58   :  { %967 = vmatpush1.bf16.msra.mxu0 %v1549_v24  ;;  %v1585_v55 = vld [vmem:[#allocation8 + $0x120] ss:$12 sps:$4 sm:$0xff]   ;;  %v1587_v56 = vld [vmem:[#allocation8 + $0x13c] ss:$12 sps:$4 sm:$0xff]   ;;  %v1590_v57 = vld [vmem:[#allocation8 + $0x138] ss:$12 sps:$4 sm:$0xff]  }
  0x59   :  { %234 = vmatpush1.bf16.msra.mxu1 %v1533_v19  ;;  %968 = vmatprep.subr.bf16.mxu0 %v1550_v26  ;;  %v1592_v58 = vld [vmem:[#allocation8 + $0x154] ss:$12 sps:$4 sm:$0xff]   ;;  %v1594_v59 = vld [vmem:[#allocation8 + $0x158] ss:$12 sps:$4 sm:$0xff]   ;;  %v1595_v60 = vld [vmem:[#allocation8 + $0x150] ss:$12 sps:$4 sm:$0xff]  }
  0x5a   :  { %1334 = vmatprep.subr.msk.bf16.mxu1 %vm175_vm0, %v1331_v23  ;;  %v1596_v61 = vld [vmem:[#allocation8 + $0x98] ss:$12 sps:$4 sm:$0xff]   ;;  %v1599_v63 = vld [vmem:[#allocation8 + $0x170] ss:$12 sps:$4 sm:$0xff]   ;;  %v1600_v0 = vld [vmem:[#allocation8 + $0x168] ss:$12 sps:$4 sm:$0xff]  }
  0x5b   :  { %v1597_v62 = vld [vmem:[#allocation8 + $0x16c] ss:$12 sps:$4 sm:$0xff]   ;;  %v1601_v1 = vld [vmem:[#allocation8 + $0xb0] ss:$12 sps:$4 sm:$0xff]   ;;  %v1605_v3 = vld [vmem:[#allocation8 + $0x248] ss:$12 sps:$4 sm:$0xff]  }
  0x5c   :  { %969 = vmatpush1.bf16.msra.mxu0 %v1552_v28  ;;  %v1604_v2 = vld [vmem:[#allocation8 + $0x184] ss:$12 sps:$4 sm:$0xff]   ;;  %v94_v7 = vld [vmem:[%s1918_s2] sm:$0xf]  ;;  %v1879_v8 = vsub.s32 1, %v97_v5  ;;  %v1883_v21 = vsub.s32 2, %v97_v5 }
  0x5d   :  { %236 = vmatpush1.bf16.msra.mxu1 %v183_v25  ;;  %970 = vmatprep.subr.bf16.mxu0 %v1553_v29  ;;  %v99_v9 = vrot.slane %v94_v7, %v1874_v6  ;;  %v110_v24 = vsub.s32 3, %v97_v5  ;;  %v275_v26 = vand.u32 127, %v96_v4  ;;  %v1602_v28 = vld [vmem:[#allocation8 + $0x180] ss:$12 sps:$4 sm:$0xff]   ;;  %v1606_v29 = vld [vmem:[#allocation8 + $0x188] ss:$12 sps:$4 sm:$0xff]  }
  0x5e   :  { %1434 = vmatprep.subr.bf16.mxu1 %v1564_v27  ;;  %v103_v10 = vrot.slane %v94_v7, %v1879_v8  ;;  %v1631_v4 = vld [vmem:[#allocation8 + $0x200] ss:$12 sps:$4 sm:$0xff]   ;;  %s1788_s26 = smov [#allocation10]   ;;  %vm1300_vm4 = vcmask 122880  }
  0x5f   :  { %v1634_v5 = vld [vmem:[#allocation8 + $0x214] ss:$12 sps:$4 sm:$0xff]   ;;  %s1308_s27 = sshll.u32 %s1788_s26, 4  ;;  %s1309_s27 = int_to_ptr.vmem [resolvable:$true] %s1308_s27 }
  0x60   :  { %1335 = vmatmul.mubr.msk.bf16.vlgmr.msra.gmra.mrb[4].mxu1 %vm171_vm1, %v1529_v11  ;;  %971 = vmatpush1.bf16.msra.mxu0 %v1555_v32  ;;  %v107_v32 = vrot.slane %v94_v7, %v1883_v21  ;;  %s1744_s28 = scalar_lea.vmem %s1309_s27, 16  ;;  %s1748_s29 = scalar_lea.vmem %s1309_s27, 32 }
  0x61   :  { %1435 = vmatpush3.bf16.msra.mxu1 %v1566_v30  ;;  %972 = vmatprep.subr.bf16.mxu0 %v1556_v33  ;;  %v1609_v30 = vld [vmem:[#allocation8 + $0x19c] ss:$12 sps:$4 sm:$0xff]   ;;  %v111_v33 = vrot.slane %v94_v7, %v110_v24  ;;  %v1635_v7 = vld [vmem:[#allocation8 + $0x2d8] ss:$12 sps:$4 sm:$0xff]   ;;  %p1745_p1 = scmp.ne.s32.totalorder %s1309_s27, %s1744_s28  ;;  %p1749_p2 = scmp.lt.s32.totalorder %s1309_s27, %s1309_s27 }
  0x62   :  { %1436 = vmatprep.subr.bf16.mxu1 %v1569_v31  ;;  %v1610_v31 = vld [vmem:[#allocation8 + $0x260] ss:$12 sps:$4 sm:$0xff]   ;;  %v1656_v24 = vld [vmem:[#allocation8 + $0x2a4] ss:$12 sps:$4 sm:$0xff]   ;;  %p1750_p3 = scmp.lt.s32.totalorder %s1748_s29, %s1744_s28 }
  0x64   :  { %973 = vmatpush1.bf16.msra.mxu0 %v1558_v36  ;;  %v1611_v36 = vld [vmem:[#allocation8 + $0x1a0] ss:$12 sps:$4 sm:$0xff]   ;;  %p1751_p4 = por %p1750_p3, %p1749_p2 }
  0x65   :  { %1437 = vmatpush3.bf16.msra.mxu1 %v1571_v34  ;;  %974 = vmatprep.subr.bf16.mxu0 %v1559_v37  ;;  %v278_v34 = vadd.s32 384, %v275_v26  ;;  %v1659_v26 = vld [vmem:[#allocation8 + $0x2bc] ss:$12 sps:$4 sm:$0xff]  }
  0x66   :  { %1438 = vmatprep.subr.bf16.mxu1 %v1574_v35  ;;  %v1607_v35 = vld [vmem:[#allocation8 + $0x198] ss:$12 sps:$4 sm:$0xff]   ;;  %p1752_p5 = pnand %p1751_p4, %p1745_p1 }
  0x67   :  { %vm282_vm2 = vcmp.lt.s32.totalorder %v278_v34, 400 }
  0x68   :  { %975 = vmatpush1.bf16.msra.mxu0 %v1561_v40 }
  0x69   :  { %1439 = vmatpush3.bf16.msra.mxu1 %v1576_v38  ;;  %976 = vmatprep.subr.bf16.mxu0 %v1562_v41  ;;  %v1614_v38 = vld [vmem:[#allocation8 + $0x1b4] ss:$12 sps:$4 sm:$0xff]  }
  0x6a   :  { %1440 = vmatprep.subr.bf16.mxu1 %v1579_v39  ;;  %v1615_v39 = vld [vmem:[#allocation8 + $0x278] ss:$12 sps:$4 sm:$0xff]  }
  0x6c   :  { %977 = vmatpush1.bf16.msra.mxu0 %v1565_v43 }
  0x6d   :  { %1441 = vmatpush3.bf16.msra.mxu1 %v1581_v42  ;;  %978 = vmatprep.subr.bf16.mxu0 %v1567_v45 }
  0x6e   :  { %1442 = vmatprep.subr.bf16.mxu1 %v1584_v44 }
  0x70   :  { %979 = vmatpush1.bf16.msra.mxu0 %v1570_v48  ;;  %v1616_v48 = vld [vmem:[#allocation8 + $0x1b8] ss:$12 sps:$4 sm:$0xff]  }
  0x71   :  { %1443 = vmatpush3.bf16.msra.mxu1 %v1586_v46  ;;  %980 = vmatprep.subr.bf16.mxu0 %v1572_v49 }
  0x72   :  { %1444 = vmatprep.subr.bf16.mxu1 %v1589_v47  ;;  %v1612_v47 = vld [vmem:[#allocation8 + $0x1b0] ss:$12 sps:$4 sm:$0xff]  }
  0x74   :  { %981 = vmatpush1.bf16.msra.mxu0 %v1575_v51  ;;  %v1619_v51 = vld [vmem:[#allocation8 + $0x1cc] ss:$12 sps:$4 sm:$0xff]  }
  0x75   :  { %1445 = vmatpush3.bf16.msra.mxu1 %v1591_v50  ;;  %982 = vmatprep.subr.bf16.mxu0 %v1577_v52  ;;  %v1620_v52 = vld [vmem:[#allocation8 + $0x290] ss:$12 sps:$4 sm:$0xff]  }
  0x76   :  { %1446 = vmatprep.subr.bf16.mxu1 %v1594_v59 }
  0x78   :  { %983 = vmatpush1.bf16.msra.mxu0 %v1580_v53 }
  0x79   :  { %984 = vmatprep.subr.bf16.mxu0 %v1582_v54  ;;  %1447 = vmatpush3.bf16.msra.mxu1 %v1596_v61  ;;  %v1625_v61 = vld [vmem:[#allocation8 + $0x2a8] ss:$12 sps:$4 sm:$0xff]  }
  0x7a   :  { %1448 = vmatprep.subr.bf16.mxu1 %v1599_v63  ;;  %v1622_v63 = vld [vmem:[#allocation8 + $0x1e0] ss:$12 sps:$4 sm:$0xff]  }
  0x7c   :  { %985 = vmatpush1.bf16.msra.mxu0 %v1585_v55 }
  0x7d   :  { %986 = vmatprep.subr.bf16.mxu0 %v1587_v56  ;;  %1449 = vmatpush3.bf16.msra.mxu1 %v1601_v1  ;;  %v1629_v1 = vld [vmem:[#allocation8 + $0x1fc] ss:$12 sps:$4 sm:$0xff]  }
  0x7e   :  { %1456 = vmatprep.subr.bf16.mxu1 %v1605_v3  ;;  %v1627_v3 = vld [vmem:[#allocation8 + $0x1f8] ss:$12 sps:$4 sm:$0xff]  }
  0x80   :  { %987 = vmatpush1.bf16.msra.mxu0 %v1590_v57  ;;  %v1617_v57 = vld [vmem:[#allocation8 + $0x1c8] ss:$12 sps:$4 sm:$0xff]  }
  0x81   :  { %988 = vmatprep.subr.bf16.mxu0 %v1592_v58  ;;  %v1621_v58 = vld [vmem:[#allocation8 + $0x1d0] ss:$12 sps:$4 sm:$0xff]  }
  0x84   :  { %989 = vmatpush1.bf16.msra.mxu0 %v1595_v60  ;;  %v1624_v60 = vld [vmem:[#allocation8 + $0x1e4] ss:$12 sps:$4 sm:$0xff]  }
  0x85   :  { %990 = vmatprep.subr.bf16.mxu0 %v1597_v62 }
  0x88   :  { %991 = vmatpush1.bf16.msra.mxu0 %v1600_v0  ;;  %v1626_v0 = vld [vmem:[#allocation8 + $0x1e8] ss:$12 sps:$4 sm:$0xff]  }
  0x89   :  { %1003 = vmatprep.subr.bf16.mxu0 %v1604_v2  ;;  %v1630_v2 = vld [vmem:[#allocation8 + $0x2c0] ss:$12 sps:$4 sm:$0xff]  }
 0x127   :  { %v222_v11 = vpop.f32.mrb[0].mxu1 }
 0x128   :  { %v223_v12 = vadd.f32 %v222_v11, %v99_v9  ;;  %v224_v13 = vpop.f32.mrb[1].mxu1  ;;  %v1639_v11 = vld [vmem:[#allocation8 + $0x22c] ss:$12 sps:$4 sm:$0xff]  }
 0x129   :  { %v225_v14 = vadd.f32 %v224_v13, %v103_v10  ;;  %v226_v15 = vpop.f32.mrb[2].mxu1  ;;  %v1637_v13 = vld [vmem:[#allocation8 + $0x228] ss:$12 sps:$4 sm:$0xff]  }
 0x12a   :  { %v227_v16 = vadd.f32 %v226_v15, %v99_v9  ;;  %v228_v17 = vpop.f32.mrb[3].mxu1  ;;  %v283_v19 = vmax.f32 %v223_v12, 0.0  ;;  %v1632_v9 = vld [vmem:[#allocation8 + $0x210] ss:$12 sps:$4 sm:$0xff]  }
 0x12b   :  { %v229_v18 = vadd.f32 %v228_v17, %v103_v10  ;;  %v284_v22 = vmax.f32 %v225_v14, 0.0  ;;  %v1636_v10 = vld [vmem:[#allocation8 + $0x218] ss:$12 sps:$4 sm:$0xff]   ;;  %v1640_v12 = vld [vmem:[#allocation8 + $0x2f0] ss:$12 sps:$4 sm:$0xff]  }
 0x12c   :  { %v287_v20 = vmax.f32 %v227_v16, 0.0  ;;  %v1641_v14 = vld [vmem:[#allocation8 + $0x230] ss:$12 sps:$4 sm:$0xff]   ;;  %v1642_v16 = vld [vmem:[#allocation8 + $0x240] ss:$12 sps:$4 sm:$0xff]  }
 0x12d   :  { %v288_v23 = vmax.f32 %v229_v18, 0.0  ;;  %v1644_v15 = vld [vmem:[#allocation8 + $0x244] ss:$12 sps:$4 sm:$0xff]   ;;  %v1647_v17 = vld [vmem:[#allocation8 + $0x25c] ss:$12 sps:$4 sm:$0xff]  }
 0x12e   :  { %v299_v25 = vpack.c.bf16 %v287_v20, %v283_v19  ;;  %v1645_v18 = vld [vmem:[#allocation8 + $0x258] ss:$12 sps:$4 sm:$0xff]   ;;  %v1650_v19 = vld [vmem:[#allocation8 + $0x274] ss:$12 sps:$4 sm:$0xff]   ;;  %v1648_v20 = vld [vmem:[#allocation8 + $0x270] ss:$12 sps:$4 sm:$0xff]  }
 0x12f   :  { %v300_v27 = vpack.c.bf16 %v288_v23, %v284_v22  ;;  %v1653_v22 = vld [vmem:[#allocation8 + $0x28c] ss:$12 sps:$4 sm:$0xff]   ;;  %v1651_v23 = vld [vmem:[#allocation8 + $0x288] ss:$12 sps:$4 sm:$0xff]  }
 0x131   :  { %992 = vmatprep.mubr.bf16.mxu0 %v300_v27  ;;  %1078 = vmatprep.mubr.bf16.mxu1 %v300_v27  ;;  %v1657_v27 = vld [vmem:[#allocation8 + $0x2b8] ss:$12 sps:$4 sm:$0xff]  }
 0x132   :  { %993 = vmatmul.mubr.bf16.vlgmr.msra.gmra.mrb[0].mxu0 %v299_v25  ;;  %1079 = vmatmul.mubr.bf16.vlgmr.msra.gmra.mrb[8].mxu1 %v299_v25  ;;  %v1654_v25 = vld [vmem:[#allocation8 + $0x2a0] ss:$12 sps:$4 sm:$0xff]  }
 0x133   :  { %1004 = vmatpush1.bf16.msra.mxu0 %v1602_v28  ;;  %1457 = vmatpush3.bf16.msra.mxu1 %v1606_v29  ;;  %v265_v37 = vpop.f32.mrb[4].mxu1  ;;  %v1662_v28 = vld [vmem:[#allocation8 + $0x2d4] ss:$12 sps:$4 sm:$0xff]   ;;  %v1660_v29 = vld [vmem:[#allocation8 + $0x2d0] ss:$12 sps:$4 sm:$0xff]  }
 0x134   :  { %1005 = vmatprep.subr.bf16.mxu0 %v1609_v30  ;;  %1458 = vmatprep.subr.bf16.mxu1 %v1610_v31  ;;  %v266_v40 = vadd.f32 %v265_v37, %v107_v32  ;;  %v267_v41 = vpop.f32.mrb[5].mxu1  ;;  %v1665_v30 = vld [vmem:[#allocation8 + $0x2ec] ss:$12 sps:$4 sm:$0xff]   ;;  %v1663_v31 = vld [vmem:[#allocation8 + $0x2e8] ss:$12 sps:$4 sm:$0xff]  }
 0x135   :  { %v268_v42 = vadd.f32 %v267_v41, %v111_v33  ;;  %v269_v43 = vpop.f32.mrb[6].mxu1 }
 0x136   :  { %v285_v44 = vmax.f32 %v266_v40, 0.0  ;;  %v270_v45 = vadd.f32 %v269_v43, %v107_v32  ;;  %v271_v46 = vpop.f32.mrb[7].mxu1  ;;  %v1134_v32 = vld [vmem:[%s1921_s5] sm:$0x7]  ;;  %s1432_s5 = sld [smem:[#allocation9 + $0x1]] }
 0x137   :  { %1006 = vmatpush1.bf16.msra.mxu0 %v1607_v35  ;;  %1459 = vmatpush3.bf16.msra.mxu1 %v1611_v36  ;;  %v286_v49 = vmax.f32 %v268_v42, 0.0  ;;  %v272_v50 = vadd.f32 %v271_v46, %v111_v33  ;;  %v1145_v33 = vrot.slane %v1134_v32, %v1879_v8  ;;  %v431_v40 = vld [vmem:[%s1920_s4] sm:$0x7]  ;;  %s1135_s4 = sld [smem:[#allocation9]] }
 0x138   :  { %1007 = vmatprep.subr.bf16.mxu0 %v1614_v38  ;;  %1460 = vmatprep.subr.bf16.mxu1 %v1615_v39  ;;  %v289_v53 = vmax.f32 %v270_v45, 0.0  ;;  %v444_v41 = vrot.slane %v431_v40, %v1883_v21 }
 0x139   :  { %v290_v54 = vmax.f32 %v272_v50, 0.0  ;;  %v294_v55 = vsel %vm282_vm2, %v286_v49, %v268_v42 }
 0x13a   :  { %v1887_v56 = vpack.c.bf16 %v289_v53, %v285_v44 }
 0x13b   :  { %1008 = vmatpush1.bf16.msra.mxu0 %v1612_v47  ;;  %1461 = vmatpush3.bf16.msra.mxu1 %v1616_v48  ;;  %v298_v59 = vsel %vm282_vm2, %v290_v54, %v272_v50 }
 0x13c   :  { %1009 = vmatprep.subr.bf16.mxu0 %v1619_v51  ;;  %1462 = vmatprep.subr.bf16.mxu1 %v1620_v52  ;;  %v302_v62 = vpack.c.bf16 %v298_v59, %v294_v55  ;;  %v436_v55 = vrot.slane %v431_v40, %v1874_v6 }
 0x13e   :  { %1119 = vmatprep.mubr.bf16.mxu1 %v302_v62  ;;  %1035 = vmatprep.mubr.bf16.mxu0 %v302_v62 }
 0x13f   :  { %1010 = vmatpush1.bf16.msra.mxu0 %v1617_v57  ;;  %1463 = vmatpush3.bf16.msra.mxu1 %v1621_v58 }
 0x140   :  { %1011 = vmatprep.subr.bf16.mxu0 %v1624_v60  ;;  %1464 = vmatprep.subr.bf16.mxu1 %v1625_v61 }
 0x143   :  { %1012 = vmatpush1.bf16.msra.mxu0 %v1622_v63  ;;  %1465 = vmatpush3.bf16.msra.mxu1 %v1626_v0 }
 0x144   :  { %1013 = vmatprep.subr.bf16.mxu0 %v1629_v1  ;;  %1466 = vmatprep.subr.bf16.mxu1 %v1630_v2 }
 0x147   :  { %1014 = vmatpush1.bf16.msra.mxu0 %v1627_v3  ;;  %1467 = vmatpush3.bf16.msra.mxu1 %v1631_v4 }
 0x148   :  { %1015 = vmatprep.subr.bf16.mxu0 %v1634_v5  ;;  %1468 = vmatprep.subr.bf16.mxu1 %v1635_v7 }
 0x14b   :  { %1016 = vmatpush1.bf16.msra.mxu0 %v1632_v9  ;;  %1469 = vmatpush3.bf16.msra.mxu1 %v1636_v10  ;;  %v1785_v9 = vmov 0.0|0.0   ;;  %v1787_v10 = vmov 0.0  }
 0x14c   :  { %1017 = vmatprep.subr.bf16.mxu0 %v1639_v11  ;;  %1470 = vmatprep.subr.bf16.mxu1 %v1640_v12  ;;  %v1149_v11 = vrot.slane %v1134_v32, %v1883_v21  ;;  %v1136_v12 = vstv %s1135_s4 }
 0x14f   :  { %1018 = vmatpush1.bf16.msra.mxu0 %v1637_v13  ;;  %1471 = vmatpush3.bf16.msra.mxu1 %v1641_v14 }
 0x150   :  { %1019 = vmatprep.subr.bf16.mxu0 %v1644_v15 }
 0x152   :  { %1120 = vmatmul.mubr.bf16.vlgmr.msra.gmra.mrb[12].mxu1 %v1887_v56 }
 0x153   :  { %1020 = vmatpush1.bf16.msra.mxu0 %v1642_v16  ;;  %1217 = vmatprep.mubr.f32.mxu1 %v1145_v33  ;;  %v1295_v16 = vstv %s1432_s5 }
 0x154   :  { %1021 = vmatprep.subr.bf16.mxu0 %v1647_v17 }
 0x157   :  { %1022 = vmatpush1.bf16.msra.mxu0 %v1645_v18  ;;  %v1298_v18 = vstv %s1433_s25 }
 0x158   :  { %1023 = vmatprep.subr.bf16.mxu0 %v1650_v19 }
 0x15b   :  { %1024 = vmatpush1.bf16.msra.mxu0 %v1648_v20 }
 0x15c   :  { %1025 = vmatprep.subr.bf16.mxu0 %v1653_v22 }
 0x15f   :  { %1026 = vmatpush1.bf16.msra.mxu0 %v1651_v23 }
 0x160   :  { %1027 = vmatprep.subr.bf16.mxu0 %v1656_v24 }
 0x163   :  { %1028 = vmatpush1.bf16.msra.mxu0 %v1654_v25 }
 0x164   :  { %1029 = vmatprep.subr.bf16.mxu0 %v1659_v26 }
 0x167   :  { %1030 = vmatpush1.bf16.msra.mxu0 %v1657_v27 }
 0x168   :  { %1031 = vmatprep.subr.bf16.mxu0 %v1662_v28 }
 0x16b   :  { %1032 = vmatpush1.bf16.msra.mxu0 %v1660_v29 }
 0x16c   :  { %1033 = vmatprep.subr.bf16.mxu0 %v1665_v30 }
 0x16f   :  { %1034 = vmatpush1.bf16.msra.mxu0 %v1663_v31 }
 0x172   :  { %1036 = vmatmul.mubr.bf16.vlgmr.msra.gmra.mrb[0].mxu0 %v1887_v56  ;;  %v440_v56 = vrot.slane %v431_v40, %v1879_v8  ;;  %v1141_v8 = vrot.slane %v1134_v32, %v1874_v6 }
 0x205   :  { %v1450_v34 = vpop.f32.mrb[8].mxu1 }
 0x206   :  { %v1451_v35 = vpop.f32.mrb[9].mxu1 }
 0x207   :  { %v1452_v36 = vadd.f32 %v1451_v35, %v1450_v34  ;;  %v1453_v37 = vpop.f32.mrb[10].mxu1 }
 0x208   :  { %v1454_v38 = vpop.f32.mrb[11].mxu1 }
 0x209   :  { %v1455_v39 = vadd.f32 %v1454_v38, %v1453_v37  ;;  %v1081_v44 = vadd.f32 %v1452_v36, %v444_v41 }
 0x20b   :  { %v1084_v48 = vadd.f32 %v1455_v39, %v444_v41 }
 0x225   :  { %v1472_v42 = vpop.f32.mrb[12].mxu1 }
 0x226   :  { %v1473_v43 = vpop.f32.mrb[13].mxu1 }
 0x227   :  { %v1474_v45 = vadd.f32 %v1473_v43, %v1472_v42  ;;  %v1475_v46 = vpop.f32.mrb[14].mxu1 }
 0x228   :  { %v1476_v47 = vpop.f32.mrb[15].mxu1 }
 0x229   :  { %v1122_v49 = vadd.f32 %v1474_v45, %v1081_v44  ;;  %v1477_v50 = vadd.f32 %v1476_v47, %v1475_v46 }
 0x22b   :  { %v1125_v51 = vadd.f32 %v1477_v50, %v1084_v48  ;;  %v1130_v52 = vmax.f32 %v1122_v49, 0.0 }
 0x22d   :  { %v1133_v53 = vmax.f32 %v1125_v51, 0.0 }
 0x22f   :  { %v1493_v54 = vpack.c.bf16 %v1133_v53, %v1130_v52 }
 0x245   :  { %v1037_v57 = vpop.f32.mrb[0].mxu0 }
 0x246   :  { %v1495_v58 = vadd.f32 %v1037_v57, %v436_v55  ;;  %v1039_v59 = vpop.f32.mrb[1].mxu0 }
 0x247   :  { %v1496_v60 = vadd.f32 %v1039_v59, %v440_v56  ;;  %v1041_v61 = vpop.f32.mrb[2].mxu0 }
 0x248   :  { %v1497_v62 = vadd.f32 %v1041_v61, %v436_v55  ;;  %v1043_v63 = vpop.f32.mrb[3].mxu0  ;;  %v1128_v1 = vmax.f32 %v1495_v58, 0.0 }
 0x249   :  { %v1498_v0 = vadd.f32 %v1043_v63, %v440_v56  ;;  %v1129_v3 = vmax.f32 %v1496_v60, 0.0 }
 0x24a   :  { %v1131_v2 = vmax.f32 %v1497_v62, 0.0 }
 0x24b   :  { %v1132_v4 = vmax.f32 %v1498_v0, 0.0 }
 0x24c   :  { %v1490_v5 = vpack.c.bf16 %v1131_v2, %v1128_v1 }
 0x24d   :  { %v1488_v7 = vpack.c.bf16 %v1132_v4, %v1129_v3 }
 0x24f   :  { %1489 = vmatprep.subr.bf16.mxu1 %v1488_v7 }
 0x250   :  { %1491 = vmatpush1.bf16.xpose.msra.mxu1 %v1490_v5 }
 0x251   :  { %1492 = vmatprep.subr.bf16.mxu1 %v1785_v9 }
 0x257   :  { %1218 = vmatmul.mubr.f32.vlgmr.msra.gmra.mrb[16].mxu1 %v1141_v8 }
 0x258   :  { %1494 = vmatpush3.bf16.xpose.msra.mxu1 %v1493_v54  ;;  %1485 = vmatprep.mubr.msk.f32.mxu1 %vm1786_vm3, %v1787_v10 }
 0x25f   :  { %1486 = vmatmul.mubr.f32.vlgmr.msra.gmra.mrb[16].mxu1 %v1149_v11 }
 0x332   :  { %v1289_v13 = vpop.f32.mrb[16].mxu1 }
 0x333   :  { %v1499_v14 = vadd.f32 %v1289_v13, %v1136_v12  ;;  %v1487_v15 = vpop.f32.mrb[17].mxu1 }
 0x335   :  { %v1293_v17 = vmax.f32 %v1499_v14, 0.0 }
 0x337   :  { %v1296_v6 = vmul.f32 %v1295_v16, %v1293_v17 }
 0x339   :  { %v1299_v19 = vadd.f32 %v1298_v18, %v1296_v6 }
 0x33b   :  { %1301 = vst.msk [vmem:[#allocation10] sm:$0x1] %vm1300_vm4, %v1299_v19 }
 0x33c   :  { %1755 = shalt.err (!%p1752_p5)
}
 0x33d   :  { %s1756_s9 = scalar_lea.hbm %s1923_s7, 16 }
 0x33e   :  { %p1757_p6 = scmp.ne.s32.totalorder %s1923_s7, %s1756_s9  ;;  %p1760_p7 = scmp.lt.u32.totalorder %s1756_s9, %s1923_s7 }
 0x340   :  { %p1762_p8 = pnand %p1760_p7, %p1757_p6 }
 0x342   :  { %1765 = shalt.err (!%p1762_p8)
}
 0x343   :  { %1311 = dma.vmem_to_hbm [thread:$0]  %s1309_s27, 16, %s1923_s7, [#allocation4]  }
 0x344   :  { %1772 = dma.done.wait [#allocation4], 16  }
 0x345   :  { %1773 = vsyncadd [#allocation4], 4294967280 }
 0x346   :  { %1315 = vsyncpa [#allocation3], 1 }
 0x347   :  { %1316 = vsyncpa [#allocation7], 1 }
 0x348   :  { %1317 = vsyncpa [#allocation4], 1 }
 0x349   :  { %1318 = vsyncpa [#allocation5], 1 }

</bundles_post_ra>
